<compile_context>
chip_gen: v7x
topology: tpu7x:2x2x1
jax: 0.10.0
libtpu: 0.0.40
codegen_flags: <defaults>
</compile_context>

<pallas_src>
import functools

import jax
import jax.numpy as jnp
import numpy as np
from jax.experimental import pallas as pl
from jax.experimental.pallas import tpu as pltpu


def _round_up(a, b):
    return ((a + b - 1) // b) * b


def map_image_kernel(x_ref, w_ref, b_ref, o_ref):
    # x_ref: (tm, C), w_ref: (C, O), b_ref: (1, O), o_ref: (tm, O)
    y = jnp.dot(x_ref[...], w_ref[...], preferred_element_type=jnp.float32)
    o_ref[...] = (y + b_ref[...]).astype(o_ref.dtype)


@functools.partial(jax.jit, static_argnames=("image_size", "tm", "out_dtype"))
def map_image(x, conv_w, gamma, beta, running_mean, running_var,
              image_size=(16, 16), tm=2048, out_dtype=jnp.float32):
    """x: (B, H, W, C) NHWC float. Returns (B, H, W, image_size[0], image_size[1])."""
    B, H, W, C = x.shape
    i0, i1 = image_size
    O = i0 * i1
    M = B * H * W

    # Flatten pixels; keep native float dtype (MXU takes bf16/f32, accumulates f32).
    if not jnp.issubdtype(x.dtype, jnp.floating):
        x = x.astype(jnp.float32)
    x2 = x.reshape(M, C)

    # Clamp the row tile to the (sublane-rounded) problem size, then pad M to a
    # tile multiple only if needed (no pad at all for small / divisible M).
    tm_eff = max(8, min(_round_up(tm, 8), _round_up(M, 8)))
    Mp = _round_up(M, tm_eff)
    if Mp != M:
        x2 = jnp.pad(x2, ((0, Mp - M), (0, 0)))

    # Conv3d weight (O, 1, C, 1, 1) -> effective matrix (C, O), with BatchNorm
    # (eval mode) folded into the weights and a bias.
    eps = 1e-5
    scale = (gamma.reshape(O) *
             jax.lax.rsqrt(running_var.reshape(O).astype(jnp.float32) + eps))
    w2 = (conv_w.reshape(O, C).T.astype(jnp.float32) * scale[None, :])   # (C, O)
    bias = (beta.reshape(O).astype(jnp.float32)
            - running_mean.reshape(O).astype(jnp.float32) * scale).reshape(1, O)

    cost = pl.CostEstimate(
        flops=2 * M * C * O,
        transcendentals=0,
        bytes_accessed=(M * C * x2.dtype.itemsize
                        + M * O * jnp.dtype(out_dtype).itemsize
                        + C * O * 4 + O * 4),
    )

    out2d = pl.pallas_call(
        map_image_kernel,
        out_shape=jax.ShapeDtypeStruct((Mp, O), out_dtype),
        grid=(Mp // tm_eff,),
        in_specs=[
            pl.BlockSpec((tm_eff, C), lambda i: (i, 0)),   # pixel tile
            pl.BlockSpec((C, O), lambda i: (0, 0)),        # folded weights (resident)
            pl.BlockSpec((1, O), lambda i: (0, 0)),        # folded bias (resident)
        ],
        out_specs=pl.BlockSpec((tm_eff, O), lambda i: (i, 0)),
        compiler_params=pltpu.CompilerParams(
            dimension_semantics=("parallel",)),
        cost_estimate=cost,
    )(x2, w2, bias)

    out2d = out2d[:M]
    # out[b, h, w, p, q] = y[b, p*i1+q, h, w]  (matches view + permute in PyTorch)
    return out2d.reshape(B, H, W, i0, i1)


def _reference(x, conv_w, gamma, beta, mean, var, image_size):
    B, H, W, C = x.shape
    i0, i1 = image_size
    O = i0 * i1
    wmat = conv_w.reshape(O, C)                       # (O, C)
    y = jnp.einsum("bhwc,oc->bhwo", x, wmat)          # per-pixel linear map
    y = (y - mean) * jax.lax.rsqrt(var + 1e-5) * gamma + beta
    return y.reshape(B, H, W, i0, i1)


if __name__ == "__main__":
    key = jax.random.PRNGKey(0)
    k_x, k_w, k_g, k_b, k_m, k_v = jax.random.split(key, 6)

    B, H, W, C = 2, 8, 8, 4
    image_size = (16, 16)
    O = image_size[0] * image_size[1]

    x = jax.random.normal(k_x, (B, H, W, C), dtype=jnp.float32)
    conv_w = jax.random.normal(k_w, (O, 1, C, 1, 1), dtype=jnp.float32) * 0.1
    gamma = 1.0 + 0.1 * jax.random.normal(k_g, (O,), dtype=jnp.float32)
    beta = 0.1 * jax.random.normal(k_b, (O,), dtype=jnp.float32)
    running_mean = 0.05 * jax.random.normal(k_m, (O,), dtype=jnp.float32)
    running_var = jax.random.uniform(k_v, (O,), dtype=jnp.float32,
                                     minval=0.5, maxval=1.5)

    out = map_image(x, conv_w, gamma, beta, running_mean, running_var,
                    image_size=image_size)
    out = jax.block_until_ready(out)

    ref = _reference(x, conv_w, gamma, beta, running_mean, running_var, image_size)
    np.testing.assert_allclose(np.asarray(out), np.asarray(ref),
                               rtol=1e-5, atol=1e-5)
    assert out.shape == (B, H, W, image_size[0], image_size[1])
    print("KERNEL_OK")
</pallas_src>

<mosaic_0001>
module attributes {stable_mosaic.version = 11 : i64} {
  func.func @map_image_kernel(%arg0: i32, %arg1: memref<128x4xf32, #tpu.memory_space<vmem>>, %arg2: memref<4x256xf32, #tpu.memory_space<vmem>>, %arg3: memref<1x256xf32, #tpu.memory_space<vmem>>, %arg4: memref<128x256xf32, #tpu.memory_space<vmem>>) attributes {dimension_semantics = [#tpu.dimension_semantics<parallel>], iteration_bounds = array<i64: 1>, scalar_prefetch = 0 : i64, scratch_operands = 0 : i64, tpu.core_type = #tpu.core_type<tc>, window_params = [{transform_indices = @transform_0, window_bounds = array<i64: 128, 4>}, {pipeline_mode = #tpu.pipeline_mode<synchronous>, transform_indices = @transform_1, window_bounds = array<i64: 4, 256>}, {pipeline_mode = #tpu.pipeline_mode<synchronous>, transform_indices = @transform_2, window_bounds = array<i64: 1, 256>}, {transform_indices = @transform_3, window_bounds = array<i64: 128, 256>}]} {
    %c0 = arith.constant 0 : index
    %c0_0 = arith.constant 0 : index
    %0 = vector.load %arg1[%c0, %c0_0] : memref<128x4xf32, #tpu.memory_space<vmem>>, vector<128x4xf32>
    %c0_1 = arith.constant 0 : index
    %c0_2 = arith.constant 0 : index
    %1 = vector.load %arg2[%c0_1, %c0_2] : memref<4x256xf32, #tpu.memory_space<vmem>>, vector<4x256xf32>
    %cst = arith.constant dense<0.000000e+00> : vector<128x256xf32>
    %2 = tpu.matmul %0, %1, %cst {dimension_numbers = #tpu.dot_dimension_numbers<[1], [0], [0], [1], [0, 0, 1, 1], [], []>} : vector<128x4xf32>, vector<4x256xf32>, vector<128x256xf32> -> vector<128x256xf32>
    %c0_3 = arith.constant 0 : index
    %c0_4 = arith.constant 0 : index
    %3 = vector.load %arg3[%c0_3, %c0_4] : memref<1x256xf32, #tpu.memory_space<vmem>>, vector<1x256xf32>
    %4 = vector.broadcast %3 : vector<1x256xf32> to vector<128x256xf32>
    %5 = arith.addf %2, %4 : vector<128x256xf32>
    %c0_5 = arith.constant 0 : index
    %c0_6 = arith.constant 0 : index
    %6 = vector.load %arg4[%c0_5, %c0_6] : memref<128x256xf32, #tpu.memory_space<vmem>>, vector<128x256xf32>
    tpu.vector_store %arg4[%c0_5, %c0_6], %5 {strides = array<i32>} : memref<128x256xf32, #tpu.memory_space<vmem>>, vector<128x256xf32>,
    return
  }
  func.func @transform_0(%arg0: i32) -> (i32, i32) {
    %c0_i32 = arith.constant 0 : i32
    %c0_i32_0 = arith.constant 0 : i32
    return %arg0, %c0_i32 : i32, i32
  }
  func.func @transform_1(%arg0: i32) -> (i32, i32) {
    %c0_i32 = arith.constant 0 : i32
    %c0_i32_0 = arith.constant 0 : i32
    %c0_i32_1 = arith.constant 0 : i32
    return %c0_i32, %c0_i32_0 : i32, i32
  }
  func.func @transform_2(%arg0: i32) -> (i32, i32) {
    %c0_i32 = arith.constant 0 : i32
    %c0_i32_0 = arith.constant 0 : i32
    %c0_i32_1 = arith.constant 0 : i32
    return %c0_i32, %c0_i32_0 : i32, i32
  }
  func.func @transform_3(%arg0: i32) -> (i32, i32) {
    %c0_i32 = arith.constant 0 : i32
    %c0_i32_0 = arith.constant 0 : i32
    return %arg0, %c0_i32 : i32, i32
  }
}

</mosaic_0001>

<bundles_post_ra>
// kernel: map_image.1
= control target key start
LH: loop header
LB: loop body
LE: loop exit
PB: predicated region body
PF: predicated region fallthrough
CT: control target
= control target key end

     0   :  { %vm94_vm0 = vcmask 1043456   ;;  %v318_v1 = vmov 0.0   ;;  %vm45_vm1 = vcmask 31744   ;;  %v33_v19 = vlaneseq  ;;  %s541_s1 = inlined_call_operand.vmem [shape: f32[4,256], index: 1, kind: input, shape index: {}]   ;;  %s542_s0 = inlined_call_operand.vmem [shape: f32[128,4], index: 0, kind: input, shape index: {}]   ;;  %s543_s2 = inlined_call_operand.vmem [shape: f32[1,256], index: 2, kind: input, shape index: {}]   ;;  %s544_s3 = inlined_call_operand.vmem [shape: f32[128,256], index: 3, kind: output, shape index: {}]  }
   0x1   :  { %v30_v0 = vld [vmem:[%s541_s1] sm:$0xff]  ;;  %163 = vmatprep.mubr.f32.mxu0 %v318_v1  ;;  %211 = vmatprep.mubr.f32.mxu1 %v318_v1  ;;  %v15_v5 = vld [vmem:[%s542_s0 + $0x8] sm:$0xff]  ;;  %v16_v7 = vld [vmem:[%s542_s0 + $0x10] sm:$0xff] }
   0x2   :  { %v44_v2 = vcombine.high %v30_v0, %v30_v0  ;;  %v14_v3 = vld [vmem:[%s542_s0] sm:$0xff]  ;;  %v23_v6 = vld [vmem:[%s542_s0 + $0x48] sm:$0xff]  ;;  %v24_v8 = vld [vmem:[%s542_s0 + $0x50] sm:$0xff]  ;;  %v34_v20 = vshrl.u32 %v33_v19, 7 }
   0x3   :  { %v22_v4 = vld [vmem:[%s542_s0 + $0x40] sm:$0xff]  ;;  %v17_v9 = vld [vmem:[%s542_s0 + $0x18] sm:$0xff]  ;;  %v19_v13 = vld [vmem:[%s542_s0 + $0x28] sm:$0xff] }
   0x4   :  { %296 = vmatprep.subr.msk.mxu0 %vm94_vm0, %v44_v2  ;;  %314 = vmatprep.subr.msk.mxu1 %vm94_vm0, %v44_v2  ;;  %v25_v10 = vld [vmem:[%s542_s0 + $0x58] sm:$0xff]  ;;  %v18_v11 = vld [vmem:[%s542_s0 + $0x20] sm:$0xff]  ;;  %v27_v14 = vld [vmem:[%s542_s0 + $0x68] sm:$0xff]  ;;  %v35_v21 = vsub.s32 0, %v34_v20  ;;  %v39_v23 = vsub.s32 1, %v34_v20 }
   0x5   :  { %297 = vmatpush1.msk.msra.mxu0 %vm94_vm0, %v30_v0  ;;  %315 = vmatpush1.msk.msra.mxu1 %vm94_vm0, %v30_v0  ;;  %v26_v12 = vld [vmem:[%s542_s0 + $0x60] sm:$0xff]  ;;  %v20_v15 = vld [vmem:[%s542_s0 + $0x30] sm:$0xff]  ;;  %v21_v17 = vld [vmem:[%s542_s0 + $0x38] sm:$0xff] }
   0x6   :  { %298 = vmatmul.mubr.msk.f32.vlgmr.msra.gmra.mrb[0].mxu0 %vm45_vm1, %v14_v3  ;;  %306 = vmatmul.mubr.msk.f32.vlgmr.msra.gmra.mrb[0].mxu1 %vm45_vm1, %v22_v4  ;;  %v28_v16 = vld [vmem:[%s542_s0 + $0x70] sm:$0xff]  ;;  %v29_v18 = vld [vmem:[%s542_s0 + $0x78] sm:$0xff]  ;;  %v31_v22 = vld [vmem:[%s543_s2] sm:$0x3] }
   0x7   :  { %169 = vmatprep.mubr.f32.mxu0 %v318_v1  ;;  %217 = vmatprep.mubr.f32.mxu1 %v318_v1  ;;  %v409_v24 = vrot.slane %v31_v22, %v35_v21  ;;  %v411_v25 = vrot.slane %v31_v22, %v39_v23 }
   0xa   :  { %299 = vmatmul.mubr.msk.f32.gmra.mrb[2].mxu0 %vm45_vm1, %v15_v5  ;;  %307 = vmatmul.mubr.msk.f32.gmra.mrb[2].mxu1 %vm45_vm1, %v23_v6 }
   0xb   :  { %175 = vmatprep.mubr.f32.mxu0 %v318_v1  ;;  %223 = vmatprep.mubr.f32.mxu1 %v318_v1 }
   0xe   :  { %300 = vmatmul.mubr.msk.f32.gmra.mrb[4].mxu0 %vm45_vm1, %v16_v7  ;;  %308 = vmatmul.mubr.msk.f32.gmra.mrb[4].mxu1 %vm45_vm1, %v24_v8 }
   0xf   :  { %181 = vmatprep.mubr.f32.mxu0 %v318_v1  ;;  %229 = vmatprep.mubr.f32.mxu1 %v318_v1 }
  0x12   :  { %301 = vmatmul.mubr.msk.f32.gmra.mrb[6].mxu0 %vm45_vm1, %v17_v9  ;;  %309 = vmatmul.mubr.msk.f32.gmra.mrb[6].mxu1 %vm45_vm1, %v25_v10 }
  0x13   :  { %187 = vmatprep.mubr.f32.mxu0 %v318_v1  ;;  %235 = vmatprep.mubr.f32.mxu1 %v318_v1 }
  0x16   :  { %302 = vmatmul.mubr.msk.f32.gmra.mrb[8].mxu0 %vm45_vm1, %v18_v11  ;;  %310 = vmatmul.mubr.msk.f32.gmra.mrb[8].mxu1 %vm45_vm1, %v26_v12 }
  0x17   :  { %193 = vmatprep.mubr.f32.mxu0 %v318_v1  ;;  %241 = vmatprep.mubr.f32.mxu1 %v318_v1 }
  0x1a   :  { %303 = vmatmul.mubr.msk.f32.gmra.mrb[10].mxu0 %vm45_vm1, %v19_v13  ;;  %311 = vmatmul.mubr.msk.f32.gmra.mrb[10].mxu1 %vm45_vm1, %v27_v14 }
  0x1b   :  { %199 = vmatprep.mubr.f32.mxu0 %v318_v1  ;;  %247 = vmatprep.mubr.f32.mxu1 %v318_v1 }
  0x1e   :  { %304 = vmatmul.mubr.msk.f32.gmra.mrb[12].mxu0 %vm45_vm1, %v20_v15  ;;  %312 = vmatmul.mubr.msk.f32.gmra.mrb[12].mxu1 %vm45_vm1, %v28_v16 }
  0x1f   :  { %205 = vmatprep.mubr.f32.mxu0 %v318_v1  ;;  %253 = vmatprep.mubr.f32.mxu1 %v318_v1 }
  0x22   :  { %305 = vmatmul.mubr.msk.f32.gmra.mrb[14].mxu0 %vm45_vm1, %v21_v17  ;;  %313 = vmatmul.mubr.msk.f32.gmra.mrb[14].mxu1 %vm45_vm1, %v29_v18 }
  0xd9   :  { %v165_v26 = vpop.f32.mrb[0].mxu0  ;;  %v213_v27 = vpop.f32.mrb[0].mxu1 }
  0xda   :  { %v166_v28 = vadd.f32 %v165_v26, %v409_v24  ;;  %v214_v29 = vadd.f32 %v213_v27, %v409_v24  ;;  %v167_v30 = vpop.f32.mrb[1].mxu0  ;;  %v215_v31 = vpop.f32.mrb[1].mxu1 }
  0xdb   :  { %v168_v32 = vadd.f32 %v167_v30, %v411_v25  ;;  %v216_v33 = vadd.f32 %v215_v31, %v411_v25 }
  0xdc   :  { %260 = vst [vmem:[%s544_s3] sm:$0xff] %v166_v28  ;;  %276 = vst [vmem:[%s544_s3 + $0x80] sm:$0xff] %v214_v29 }
  0xdd   :  { %261 = vst [vmem:[%s544_s3 + $0x8] sm:$0xff] %v168_v32  ;;  %277 = vst [vmem:[%s544_s3 + $0x88] sm:$0xff] %v216_v33  ;;  %v171_v34 = vpop.f32.mrb[2].mxu0  ;;  %v219_v35 = vpop.f32.mrb[2].mxu1 }
  0xde   :  { %v172_v36 = vadd.f32 %v171_v34, %v409_v24  ;;  %v220_v37 = vadd.f32 %v219_v35, %v409_v24  ;;  %v173_v38 = vpop.f32.mrb[3].mxu0  ;;  %v221_v39 = vpop.f32.mrb[3].mxu1 }
  0xdf   :  { %v174_v40 = vadd.f32 %v173_v38, %v411_v25  ;;  %v222_v41 = vadd.f32 %v221_v39, %v411_v25 }
  0xe0   :  { %262 = vst [vmem:[%s544_s3 + $0x10] sm:$0xff] %v172_v36  ;;  %278 = vst [vmem:[%s544_s3 + $0x90] sm:$0xff] %v220_v37 }
  0xe1   :  { %263 = vst [vmem:[%s544_s3 + $0x18] sm:$0xff] %v174_v40  ;;  %279 = vst [vmem:[%s544_s3 + $0x98] sm:$0xff] %v222_v41  ;;  %v177_v42 = vpop.f32.mrb[4].mxu0  ;;  %v225_v43 = vpop.f32.mrb[4].mxu1 }
  0xe2   :  { %v178_v44 = vadd.f32 %v177_v42, %v409_v24  ;;  %v226_v45 = vadd.f32 %v225_v43, %v409_v24  ;;  %v179_v46 = vpop.f32.mrb[5].mxu0  ;;  %v227_v47 = vpop.f32.mrb[5].mxu1 }
  0xe3   :  { %v180_v48 = vadd.f32 %v179_v46, %v411_v25  ;;  %v228_v49 = vadd.f32 %v227_v47, %v411_v25 }
  0xe4   :  { %264 = vst [vmem:[%s544_s3 + $0x20] sm:$0xff] %v178_v44  ;;  %280 = vst [vmem:[%s544_s3 + $0xa0] sm:$0xff] %v226_v45 }
  0xe5   :  { %265 = vst [vmem:[%s544_s3 + $0x28] sm:$0xff] %v180_v48  ;;  %281 = vst [vmem:[%s544_s3 + $0xa8] sm:$0xff] %v228_v49  ;;  %v183_v50 = vpop.f32.mrb[6].mxu0  ;;  %v231_v51 = vpop.f32.mrb[6].mxu1 }
  0xe6   :  { %v184_v52 = vadd.f32 %v183_v50, %v409_v24  ;;  %v232_v53 = vadd.f32 %v231_v51, %v409_v24  ;;  %v185_v54 = vpop.f32.mrb[7].mxu0  ;;  %v233_v55 = vpop.f32.mrb[7].mxu1 }
  0xe7   :  { %v186_v56 = vadd.f32 %v185_v54, %v411_v25  ;;  %v234_v57 = vadd.f32 %v233_v55, %v411_v25 }
  0xe8   :  { %266 = vst [vmem:[%s544_s3 + $0x30] sm:$0xff] %v184_v52  ;;  %282 = vst [vmem:[%s544_s3 + $0xb0] sm:$0xff] %v232_v53 }
  0xe9   :  { %267 = vst [vmem:[%s544_s3 + $0x38] sm:$0xff] %v186_v56  ;;  %283 = vst [vmem:[%s544_s3 + $0xb8] sm:$0xff] %v234_v57  ;;  %v189_v58 = vpop.f32.mrb[8].mxu0  ;;  %v237_v59 = vpop.f32.mrb[8].mxu1 }
  0xea   :  { %v190_v60 = vadd.f32 %v189_v58, %v409_v24  ;;  %v238_v61 = vadd.f32 %v237_v59, %v409_v24  ;;  %v191_v62 = vpop.f32.mrb[9].mxu0  ;;  %v239_v63 = vpop.f32.mrb[9].mxu1 }
  0xeb   :  { %v192_v0 = vadd.f32 %v191_v62, %v411_v25  ;;  %v240_v1 = vadd.f32 %v239_v63, %v411_v25 }
  0xec   :  { %268 = vst [vmem:[%s544_s3 + $0x40] sm:$0xff] %v190_v60  ;;  %284 = vst [vmem:[%s544_s3 + $0xc0] sm:$0xff] %v238_v61 }
  0xed   :  { %269 = vst [vmem:[%s544_s3 + $0x48] sm:$0xff] %v192_v0  ;;  %285 = vst [vmem:[%s544_s3 + $0xc8] sm:$0xff] %v240_v1  ;;  %v195_v2 = vpop.f32.mrb[10].mxu0  ;;  %v243_v3 = vpop.f32.mrb[10].mxu1 }
  0xee   :  { %v196_v4 = vadd.f32 %v195_v2, %v409_v24  ;;  %v244_v5 = vadd.f32 %v243_v3, %v409_v24  ;;  %v197_v6 = vpop.f32.mrb[11].mxu0  ;;  %v245_v7 = vpop.f32.mrb[11].mxu1 }
  0xef   :  { %v198_v8 = vadd.f32 %v197_v6, %v411_v25  ;;  %v246_v9 = vadd.f32 %v245_v7, %v411_v25 }
  0xf0   :  { %270 = vst [vmem:[%s544_s3 + $0x50] sm:$0xff] %v196_v4  ;;  %286 = vst [vmem:[%s544_s3 + $0xd0] sm:$0xff] %v244_v5 }
  0xf1   :  { %271 = vst [vmem:[%s544_s3 + $0x58] sm:$0xff] %v198_v8  ;;  %287 = vst [vmem:[%s544_s3 + $0xd8] sm:$0xff] %v246_v9  ;;  %v201_v10 = vpop.f32.mrb[12].mxu0  ;;  %v249_v11 = vpop.f32.mrb[12].mxu1 }
  0xf2   :  { %v202_v12 = vadd.f32 %v201_v10, %v409_v24  ;;  %v250_v13 = vadd.f32 %v249_v11, %v409_v24  ;;  %v203_v14 = vpop.f32.mrb[13].mxu0  ;;  %v251_v15 = vpop.f32.mrb[13].mxu1 }
  0xf3   :  { %v204_v16 = vadd.f32 %v203_v14, %v411_v25  ;;  %v252_v17 = vadd.f32 %v251_v15, %v411_v25 }
  0xf4   :  { %272 = vst [vmem:[%s544_s3 + $0x60] sm:$0xff] %v202_v12  ;;  %288 = vst [vmem:[%s544_s3 + $0xe0] sm:$0xff] %v250_v13 }
  0xf5   :  { %273 = vst [vmem:[%s544_s3 + $0x68] sm:$0xff] %v204_v16  ;;  %289 = vst [vmem:[%s544_s3 + $0xe8] sm:$0xff] %v252_v17  ;;  %v207_v18 = vpop.f32.mrb[14].mxu0  ;;  %v255_v19 = vpop.f32.mrb[14].mxu1 }
  0xf6   :  { %v208_v20 = vadd.f32 %v207_v18, %v409_v24  ;;  %v256_v21 = vadd.f32 %v255_v19, %v409_v24  ;;  %v209_v22 = vpop.f32.mrb[15].mxu0  ;;  %v257_v23 = vpop.f32.mrb[15].mxu1 }
  0xf7   :  { %v210_v26 = vadd.f32 %v209_v22, %v411_v25  ;;  %v258_v27 = vadd.f32 %v257_v23, %v411_v25 }
  0xf8   :  { %274 = vst [vmem:[%s544_s3 + $0x70] sm:$0xff] %v208_v20  ;;  %290 = vst [vmem:[%s544_s3 + $0xf0] sm:$0xff] %v256_v21 }
  0xf9   :  { %275 = vst [vmem:[%s544_s3 + $0x78] sm:$0xff] %v210_v26  ;;  %291 = vst [vmem:[%s544_s3 + $0xf8] sm:$0xff] %v258_v27 }

</bundles_post_ra>
